<compile_context>
chip_gen: v6e
topology: v6e:2x2x1
jax: 0.10.0
libtpu: 0.0.40
codegen_flags: <defaults>
</compile_context>

<pallas_src>
import functools

import jax
import jax.numpy as jnp
from jax.experimental import pallas as pl
from jax.experimental.pallas import tpu as pltpu

_LANES = 128
_ACC_ROWS_MAX = 32          # accumulator height -> 4 independent f32 vregs


def _sublane_multiple(dtype):
    # Packed dtypes need larger second-minor alignment (bf16 -> 16, int8 -> 32).
    return max(8, 32 // jnp.dtype(dtype).itemsize)


def _num_tensorcore_split():
    """2 on v7x-class chips (2 TensorCores per chip), else 1."""
    try:
        dev = jax.devices()[0]
        if dev.platform != "tpu":
            return 1
        kind = str(getattr(dev, "device_kind", "")).lower()
        if "v7" in kind or "tpu7" in kind:
            return 2
    except Exception:
        pass
    return 1


def _smape_kernel(p_ref, t_ref, o_ref, *, epsilon, row_block, acc_rows,
                  n_blocks, full_rows, rem_lanes, needs_mask, approx):
    c = pl.program_id(0)
    i = pl.program_id(1)
    inner = pl.num_programs(1)
    gb = c * inner + i                     # global (unclamped) row-block index

    # Output block is the accumulator (same block index across the inner
    # reduction axis) -> zero it on the first inner step.
    @pl.when(i == 0)
    def _():
        o_ref[...] = jnp.zeros_like(o_ref)

    def ratio_tile():
        p = p_ref[...].astype(jnp.float32)
        t = t_ref[...].astype(jnp.float32)
        num = jnp.abs(p - t)
        den = jnp.abs(p) + jnp.abs(t) + epsilon
        # approx=True routes 1/x to the EUP slot (idle here), keeping the hot
        # loop to abs/sub/add/mul on the VALUs.
        return num * pl.reciprocal(den, approx=approx)

    def accumulate(vals):
        # Fold (row_block, 128) into (acc_rows, 128): several independent
        # vreg accumulation chains, pure VPU adds, no per-tile XLU reduce.
        o_ref[...] += vals.reshape(
            row_block // acc_rows, acc_rows, _LANES).sum(axis=0)

    def masked_accumulate():
        # Zero everything at/after the true element count: lane-pad tail,
        # partial last row-block, and tiny-input row padding.
        row_ids = gb * row_block + jax.lax.broadcasted_iota(
            jnp.int32, (row_block, _LANES), 0)
        if rem_lanes == 0:
            mask = row_ids < full_rows
        else:
            lane_ids = jax.lax.broadcasted_iota(
                jnp.int32, (row_block, _LANES), 1)
            mask = (row_ids < full_rows) | (
                (row_ids == full_rows) & (lane_ids < rem_lanes))
        accumulate(jnp.where(mask, ratio_tile(), 0.0))

    if not needs_mask:
        # Exactly divisible everything: every tile takes the fast path.
        accumulate(ratio_tile())
    else:
        is_tail = gb >= n_blocks - 1

        @pl.when(jnp.logical_not(is_tail))
        def _():                           # steady-state tiles: no mask cost
            accumulate(ratio_tile())

        @pl.when(is_tail & (gb < n_blocks))
        def _():                           # last valid block: masked
            masked_accumulate()
        # gb >= n_blocks: redundant clamped block (odd n_blocks under the
        # 2-core split) contributes zero -> compute is skipped entirely.


def adjusted_smape_loss(y_pred, y_true, epsilon=1e-6, approx_reciprocal=True):
    """Pallas TPU implementation of AdjustedSMAPELoss.forward."""
    assert y_pred.shape == y_true.shape, "y_pred and y_true must match in shape"
    total_n = int(y_pred.size)
    assert total_n > 0, "empty input"

    # Native dtypes (the kernel up-casts per tile); ravel is a free reshape.
    flat_p = jnp.ravel(y_pred)
    flat_t = jnp.ravel(y_true)

    align = max(_sublane_multiple(flat_p.dtype), _sublane_multiple(flat_t.dtype))

    # Pad only for the lane remainder (rare) and for tiny inputs (rows < align)
    # so a block never exceeds the array extent; padded values are masked.
    lane_pad = (-total_n) % _LANES
    rows = (total_n + lane_pad) // _LANES
    row_pad = align - rows if rows < align else 0
    pad = lane_pad + row_pad * _LANES
    if pad:
        flat_p = jnp.pad(flat_p, (0, pad))
        flat_t = jnp.pad(flat_t, (0, pad))
    rows_padded = rows + row_pad

    p2d = flat_p.reshape(rows_padded, _LANES)
    t2d = flat_t.reshape(rows_padded, _LANES)

    ncores = _num_tensorcore_split()

    # Keep ~constant HBM bytes per input tile regardless of dtype: ~1 MiB on
    # single-TC chips (well inside v5e's 16 MiB scoped-VMEM default with
    # double buffering), ~2 MiB on v7x (higher per-TC HBM bandwidth, 32 MiB
    # default scoped VMEM).
    tile_bytes = (2 << 20) if ncores == 2 else (1 << 20)
    itemsize = max(p2d.dtype.itemsize, t2d.dtype.itemsize)
    max_rows = max(align, (tile_bytes // (_LANES * itemsize)) // align * align)
    row_block = max(align, min(max_rows, rows_padded // align * align))

    # Widest accumulator (<= 32 rows) that divides the row block.
    acc_rows = _ACC_ROWS_MAX
    while row_block % acc_rows:
        acc_rows //= 2

    n_blocks = -(-rows_padded // row_block)      # ceil div
    inner = -(-n_blocks // ncores)               # row blocks per core

    needs_mask = (
        rows_padded * _LANES != total_n          # lane / tiny-row padding
        or n_blocks * row_block != rows_padded   # partial last block
        or inner * ncores != n_blocks            # redundant clamped block(s)
    )

    def in_map(c, i):
        # Clamp redundant trailing blocks (odd n_blocks under the core split)
        # onto the last valid block; their compute is skipped in-kernel.
        return (jnp.minimum(c * inner + i, n_blocks - 1), 0)

    kernel = functools.partial(
        _smape_kernel,
        epsilon=float(epsilon),
        row_block=row_block,
        acc_rows=acc_rows,
        n_blocks=n_blocks,
        full_rows=total_n // _LANES,
        rem_lanes=total_n % _LANES,
        needs_mask=needs_mask,
        approx=bool(approx_reciprocal),
    )

    partials = pl.pallas_call(
        kernel,
        out_shape=jax.ShapeDtypeStruct((ncores * acc_rows, _LANES), jnp.float32),
        grid_spec=pltpu.PrefetchScalarGridSpec(
            num_scalar_prefetch=0,
            grid=(ncores, inner),
            in_specs=[
                pl.BlockSpec((row_block, _LANES), in_map),
                pl.BlockSpec((row_block, _LANES), in_map),
            ],
            out_specs=pl.BlockSpec((acc_rows, _LANES), lambda c, i: (c, 0)),
        ),
        compiler_params=pltpu.CompilerParams(
            dimension_semantics=("parallel", "arbitrary"),
        ),
    )(p2d, t2d)

    # Single tiny cross-lane reduce + scale outside the kernel.
    return jnp.sum(partials) * (1.0 / total_n)


def _reference_smape(y_pred, y_true, epsilon=1e-6):
    num = jnp.abs(y_pred - y_true)
    den = jnp.abs(y_pred) + jnp.abs(y_true) + epsilon
    return jnp.mean(num / den * 2.0) / 2.0


if __name__ == "__main__":
    key = jax.random.PRNGKey(0)
    k1, k2 = jax.random.split(key)

    # Small NCHW-shaped tensors (the loss is shape-agnostic).
    shape = (2, 4, 16, 16)
    y_pred = jax.random.normal(k1, shape, dtype=jnp.float32)
    y_true = jax.random.normal(k2, shape, dtype=jnp.float32)

    ref = jax.block_until_ready(_reference_smape(y_pred, y_true))

    # Exact-reciprocal path: tight numerical check.
    loss_exact = jax.block_until_ready(
        adjusted_smape_loss(y_pred, y_true, approx_reciprocal=False))
    assert jnp.allclose(loss_exact, ref, rtol=1e-5, atol=1e-6), (loss_exact, ref)

    # Default fast path (EUP approximate reciprocal): small per-element vrcp
    # error largely averages out in the mean -> loose tolerance.
    loss_fast = jax.block_until_ready(adjusted_smape_loss(y_pred, y_true))
    assert jnp.allclose(loss_fast, ref, rtol=2e-2, atol=1e-3), (loss_fast, ref)

    # Ragged / tiny shape exercises lane + row padding and the masked tail.
    shape2 = (3, 5, 7)
    yp2 = jax.random.normal(k1, shape2, dtype=jnp.float32)
    yt2 = jax.random.normal(k2, shape2, dtype=jnp.float32)
    ref2 = jax.block_until_ready(_reference_smape(yp2, yt2))
    loss2 = jax.block_until_ready(
        adjusted_smape_loss(yp2, yt2, approx_reciprocal=False))
    assert jnp.allclose(loss2, ref2, rtol=1e-5, atol=1e-6), (loss2, ref2)

    print("KERNEL_OK")
</pallas_src>

<mosaic_0001>
module attributes {stable_mosaic.version = 11 : i64} {
  func.func @_smape_kernel(%arg0: i32, %arg1: i32, %arg2: memref<16x128xf32, #tpu.memory_space<vmem>>, %arg3: memref<16x128xf32, #tpu.memory_space<vmem>>, %arg4: memref<16x128xf32, #tpu.memory_space<vmem>>) attributes {dimension_semantics = [#tpu.dimension_semantics<parallel>, #tpu.dimension_semantics<arbitrary>], iteration_bounds = array<i64: 1, 1>, scalar_prefetch = 0 : i64, scratch_operands = 0 : i64, tpu.core_type = #tpu.core_type<tc>, window_params = [{transform_indices = @transform_0, window_bounds = array<i64: 16, 128>}, {transform_indices = @transform_1, window_bounds = array<i64: 16, 128>}, {transform_indices = @transform_2, window_bounds = array<i64: 16, 128>}]} {
    %c0_i32 = arith.constant 0 : i32
    %0 = arith.cmpi eq, %arg1, %c0_i32 : i32
    %1 = arith.extui %0 : i1 to i32
    %c0_i32_0 = arith.constant 0 : i32
    %2 = arith.cmpi ne, %1, %c0_i32_0 : i32
    scf.if %2 {
      %cst_9 = arith.constant 0.000000e+00 : f32
      %19 = vector.broadcast %cst_9 : f32 to vector<16x128xf32>
      %c0_10 = arith.constant 0 : index
      %c0_11 = arith.constant 0 : index
      %20 = vector.load %arg4[%c0_10, %c0_11] : memref<16x128xf32, #tpu.memory_space<vmem>>, vector<16x128xf32>
      tpu.vector_store %arg4[%c0_10, %c0_11], %19 {strides = array<i32>} : memref<16x128xf32, #tpu.memory_space<vmem>>, vector<16x128xf32>,
    } else {
    }
    %c0 = arith.constant 0 : index
    %c0_1 = arith.constant 0 : index
    %3 = vector.load %arg2[%c0, %c0_1] : memref<16x128xf32, #tpu.memory_space<vmem>>, vector<16x128xf32>
    %c0_2 = arith.constant 0 : index
    %c0_3 = arith.constant 0 : index
    %4 = vector.load %arg3[%c0_2, %c0_3] : memref<16x128xf32, #tpu.memory_space<vmem>>, vector<16x128xf32>
    %5 = arith.subf %3, %4 : vector<16x128xf32>
    %6 = math.absf %5 : vector<16x128xf32>
    %7 = math.absf %3 : vector<16x128xf32>
    %8 = math.absf %4 : vector<16x128xf32>
    %9 = arith.addf %7, %8 : vector<16x128xf32>
    %cst = arith.constant 9.99999997E-7 : f32
    %10 = vector.broadcast %cst : f32 to vector<16x128xf32>
    %11 = arith.addf %9, %10 : vector<16x128xf32>
    %12 = tpu.reciprocal %11 : vector<16x128xf32> -> vector<16x128xf32>
    %13 = arith.mulf %6, %12 : vector<16x128xf32>
    %c0_4 = arith.constant 0 : index
    %c0_5 = arith.constant 0 : index
    %14 = vector.load %arg4[%c0_4, %c0_5] : memref<16x128xf32, #tpu.memory_space<vmem>>, vector<16x128xf32>
    %15 = vector.shape_cast %13 : vector<16x128xf32> to vector<1x16x128xf32>
    %cst_6 = arith.constant dense<0.000000e+00> : vector<16x128xf32>
    %16 = vector.multi_reduction <add>, %15, %cst_6 [0] : vector<1x16x128xf32> to vector<16x128xf32>
    %17 = arith.addf %14, %16 : vector<16x128xf32>
    %c0_7 = arith.constant 0 : index
    %c0_8 = arith.constant 0 : index
    %18 = vector.load %arg4[%c0_7, %c0_8] : memref<16x128xf32, #tpu.memory_space<vmem>>, vector<16x128xf32>
    tpu.vector_store %arg4[%c0_7, %c0_8], %17 {strides = array<i32>} : memref<16x128xf32, #tpu.memory_space<vmem>>, vector<16x128xf32>,
    return
  }
  func.func @transform_0(%arg0: i32, %arg1: i32) -> (i32, i32) {
    %c1_i32 = arith.constant 1 : i32
    %0 = arith.muli %arg0, %c1_i32 : i32
    %1 = arith.addi %0, %arg1 : i32
    %c0_i32 = arith.constant 0 : i32
    %2 = arith.minsi %1, %c0_i32 : i32
    %c0_i32_0 = arith.constant 0 : i32
    %c0_i32_1 = arith.constant 0 : i32
    return %2, %c0_i32_0 : i32, i32
  }
  func.func @transform_1(%arg0: i32, %arg1: i32) -> (i32, i32) {
    %c1_i32 = arith.constant 1 : i32
    %0 = arith.muli %arg0, %c1_i32 : i32
    %1 = arith.addi %0, %arg1 : i32
    %c0_i32 = arith.constant 0 : i32
    %2 = arith.minsi %1, %c0_i32 : i32
    %c0_i32_0 = arith.constant 0 : i32
    %c0_i32_1 = arith.constant 0 : i32
    return %2, %c0_i32_0 : i32, i32
  }
  func.func @transform_2(%arg0: i32, %arg1: i32) -> (i32, i32) {
    %c0_i32 = arith.constant 0 : i32
    %c0_i32_0 = arith.constant 0 : i32
    return %arg0, %c0_i32 : i32, i32
  }
}

</mosaic_0001>

<bundles_post_ra>
// kernel: tpu_custom_call.1
= control target key start
LH: loop header
LB: loop body
LE: loop exit
PB: predicated region body
PF: predicated region fallthrough
CT: control target
= control target key end

     0   :  { %7 = vsyncpa [#allocation3], 0  ;;  %s230_s0 = inlined_call_operand.hbm [shape: f32[16,128], index: 0, kind: input, shape index: {}]   ;;  %s231_s1 = inlined_call_operand.hbm [shape: f32[16,128], index: 1, kind: input, shape index: {}]   ;;  %s232_s2 = inlined_call_operand.hbm [shape: f32[16,128], index: 2, kind: output, shape index: {}]  }
   0x1   :  { %8 = vsyncpa [#allocation6], 0 }
   0x2   :  { %9 = vsyncpa [#allocation4], 0  ;;  %s192_s9 = smov [#allocation2]  }
   0x3   :  { %s21_s10 = sshll.u32 %s192_s9, 4  ;;  %s22_s10 = int_to_ptr.vmem [resolvable:$true] %s21_s10 }
   0x4   :  { %s134_s11 = scalar_lea.vmem %s22_s10, 256  ;;  %p139_p1 = scmp.lt.s32.totalorder %s22_s10, %s22_s10 }
   0x5   :  { %p135_p0 = scmp.ne.s32.totalorder %s22_s10, %s134_s11  ;;  %p140_p2 = scmp.lt.s32.totalorder %s134_s11, %s134_s11 }
   0x7   :  { %p141_p3 = por %p140_p2, %p139_p1 }
   0x9   :  { %p142_p4 = pnand %p141_p3, %p135_p0 }
   0xb   :  { %145 = shalt.err (!%p142_p4)
}
   0xc   :  { %s193_s12 = smov 128   ;;  %s194_s13 = smov 8  }
   0xd   :  { %27 = dma.hbm_to_vmem [thread:$0]  %s230_s0, 256, %s22_s10, [#allocation3], %s193_s12, %s193_s12, %s194_s13  }
   0xe   :  { %s195_s16 = smov [#allocation5]  }
   0xf   :  { %s39_s17 = sshll.u32 %s195_s16, 4  ;;  %s40_s17 = int_to_ptr.vmem [resolvable:$true] %s39_s17 }
  0x10   :  { %s154_s18 = scalar_lea.vmem %s40_s17, 256  ;;  %p159_p6 = scmp.lt.s32.totalorder %s40_s17, %s40_s17 }
  0x11   :  { %p155_p5 = scmp.ne.s32.totalorder %s40_s17, %s154_s18  ;;  %p160_p7 = scmp.lt.s32.totalorder %s154_s18, %s154_s18 }
  0x13   :  { %p161_p8 = por %p160_p7, %p159_p6 }
  0x15   :  { %p162_p9 = pnand %p161_p8, %p155_p5 }
  0x17   :  { %165 = shalt.err (!%p162_p9)
}
  0x18   :  { %45 = dma.hbm_to_vmem [thread:$0]  %s231_s1, 256, %s40_s17, [#allocation6], %s193_s12, %s193_s12, %s194_s13  }
  0x19   :  { %186 = dma.done.wait [#allocation3], 256  }
  0x1a   :  { %187 = vsyncadd [#allocation3], 4294967040 }
  0x1b   :  { %188 = dma.done.wait [#allocation6], 256  }
  0x1c   :  { %189 = vsyncadd [#allocation6], 4294967040  ;;  %v66_v0 = vld [vmem:[#allocation2] sm:$0xff]  ;;  %v68_v1 = vld [vmem:[#allocation5] sm:$0xff]  ;;  %s196_s0 = smov [#allocation7]  }
  0x1d   :  { %v67_v2 = vld [vmem:[#allocation2 + $0x8] sm:$0xff]  ;;  %v74_v3 = vand.u32 2147483647, %v66_v0  ;;  %v76_v4 = vand.u32 2147483647, %v68_v1  ;;  %v69_v5 = vld [vmem:[#allocation5 + $0x8] sm:$0xff]  ;;  %v70_v12 = vsub.f32 %v66_v0, %v68_v1 }
  0x1e   :  { %v75_v6 = vand.u32 2147483647, %v67_v2  ;;  %v77_v7 = vand.u32 2147483647, %v69_v5  ;;  %v71_v13 = vsub.f32 %v67_v2, %v69_v5  ;;  %s99_s1 = sshll.u32 %s196_s0, 4  ;;  %s100_s1 = int_to_ptr.vmem [resolvable:$true] %s99_s1 }
  0x1f   :  { %v78_v8 = vadd.f32 %v76_v4, %v74_v3  ;;  %v72_v14 = vand.u32 2147483647, %v70_v12  ;;  %s166_s21 = scalar_lea.vmem %s100_s1, 256  ;;  %p171_p11 = scmp.lt.s32.totalorder %s100_s1, %s100_s1 }
  0x20   :  { %v79_v9 = vadd.f32 %v77_v7, %v75_v6  ;;  %v73_v15 = vand.u32 2147483647, %v71_v13  ;;  %p167_p10 = scmp.ne.s32.totalorder %s100_s1, %s166_s21  ;;  %p172_p12 = scmp.lt.s32.totalorder %s166_s21, %s166_s21 }
  0x21   :  { %v80_v10 = vadd.f32 1e-06, %v78_v8 }
  0x22   :  { %v81_v11 = vadd.f32 1e-06, %v79_v9  ;;  %p173_p13 = por %p172_p12, %p171_p11 }
  0x23   :  { %122 = vrcp.f32 %v80_v10 }
  0x24   :  { %124 = vrcp.f32 %v81_v11  ;;  %p174_p0 = pnand %p173_p13, %p167_p10 }
  0x30   :  { %v123_v16 = vpop.eup %122 }
  0x31   :  { %v125_v17 = vpop.eup %124  ;;  %v84_v18 = vmul.f32 %v123_v16, %v72_v14 }
  0x32   :  { %v85_v19 = vmul.f32 %v125_v17, %v73_v15 }
  0x33   :  { %92 = vst [vmem:[#allocation7] sm:$0xff] %v84_v18 }
  0x34   :  { %93 = vst [vmem:[#allocation7 + $0x8] sm:$0xff] %v85_v19 }
  0x35   :  { %177 = shalt.err (!%p174_p0)
}
  0x36   :  { %105 = dma.vmem_to_hbm [thread:$0]  %s100_s1, 256, %s232_s2, [#allocation4], %s193_s12, %s193_s12, %s194_s13  }
  0x37   :  { %190 = dma.done.wait [#allocation4], 256  }
  0x38   :  { %191 = vsyncadd [#allocation4], 4294967040 }
  0x39   :  { %109 = vsyncpa [#allocation3], 1 }
  0x3a   :  { %110 = vsyncpa [#allocation6], 1 }
  0x3b   :  { %111 = vsyncpa [#allocation4], 1 }

</bundles_post_ra>
